<compile_context>
chip_gen: v6e
topology: v6e:2x2x1
jax: 0.10.0
libtpu: 0.0.40
codegen_flags: <defaults>
</compile_context>

<pallas_src>
import math
import functools

import jax
import jax.numpy as jnp
from jax import lax
from jax.experimental import pallas as pl
from jax.experimental.pallas import tpu as pltpu

_LANE = 128


def _round_up(x, m):
    return ((x + m - 1) // m) * m


def _divisors_desc(n):
    return [d for d in range(n, 0, -1) if n % d == 0]


@functools.lru_cache(maxsize=1)
def _vmem_budget_and_ceiling():
    """Chip-aware VMEM budget: ~70% of physical VMEM (v5e/v6e 128 MiB -> ~90 MiB,
    v7x 64 MiB -> ~45 MiB). Falls back to a conservative 64-MiB-part assumption."""
    cap = 64 << 20
    try:
        info = pltpu.get_tpu_info()
        for attr in ("vmem_capacity_bytes", "vmem_size_bytes", "vmem_bytes"):
            val = getattr(info, attr, None)
            if val:
                cap = int(val)
                break
    except Exception:
        pass
    budget = min(int(cap * 0.70), 100 << 20)
    ceiling = int(cap * 0.90)
    return budget, ceiling


# -----------------------------------------------------------------------------
# Pallas kernel: fused dual matmul (mean path + variance path), K-reduced.
# -----------------------------------------------------------------------------
def _vbconv_kernel(p_ref, wmu_ref, wsig_ref, bmu_ref, bsig_ref,
                   mu_ref, sig_ref, acc_mu, acc_sig, *, precision):
    # p_ref:    (tile_m, tile_k)   im2col patch tile (compute dtype)
    # wmu_ref:  (tile_k, tile_oc)  weight_mu tile
    # wsig_ref: (tile_k, tile_oc)  exp(weight_log_sig2) tile
    # bmu/bsig: (1, tile_oc)       f32 biases (bias_mu / exp(bias_log_sig2))
    # acc_*:    (tile_m, tile_oc)  f32 VMEM accumulators (persist over K axis)
    kk = pl.program_id(2)

    @pl.when(kk == 0)
    def _init():
        acc_mu[...] = jnp.zeros_like(acc_mu)
        acc_sig[...] = jnp.zeros_like(acc_sig)

    p = p_ref[...]
    # TODO(synk): cache p*p in a VMEM scratch when there are multiple OC tiles
    # (it is only recomputed per OC tile; the common full-OC tiling avoids it).
    p2 = p * p
    acc_mu[...] += jnp.dot(p, wmu_ref[...],
                           preferred_element_type=jnp.float32, precision=precision)
    acc_sig[...] += jnp.dot(p2, wsig_ref[...],
                            preferred_element_type=jnp.float32, precision=precision)

    @pl.when(kk == pl.num_programs(2) - 1)
    def _finalize():
        mu_ref[...] = (acc_mu[...] + bmu_ref[...]).astype(mu_ref.dtype)
        sig_ref[...] = (acc_sig[...] + bsig_ref[...]).astype(sig_ref.dtype)


# -----------------------------------------------------------------------------
# im2col: NCHW -> (N*OH*OW, C*KH*KW), flattening order (C, KH, KW).
# -----------------------------------------------------------------------------
# TODO(synk): fold the KH*KW window loop into the Pallas grid (strided input
# slices + the existing K-reduction accumulators) to avoid the KH*KW-fold HBM
# blowup of materialized patches for large, memory-bound conv shapes.
def _im2col(x, kh, kw, stride, padding, dilation):
    n, c, h, w = x.shape
    oh = (h + 2 * padding - dilation * (kh - 1) - 1) // stride + 1
    ow = (w + 2 * padding - dilation * (kw - 1) - 1) // stride + 1
    xp = jnp.pad(x, ((0, 0), (0, 0), (padding, padding), (padding, padding)))
    cols = []
    for i in range(kh):
        for j in range(kw):
            sl = xp[:, :,
                    i * dilation: i * dilation + stride * oh: stride,
                    j * dilation: j * dilation + stride * ow: stride]
            cols.append(sl)                            # (N, C, OH, OW)
    col = jnp.stack(cols, axis=2)                      # (N, C, KH*KW, OH, OW)
    col = col.transpose(0, 3, 4, 1, 2)                 # (N, OH, OW, C, KH*KW)
    col = col.reshape(n * oh * ow, c * kh * kw)        # (M, K)
    return col, oh, ow


# -----------------------------------------------------------------------------
# Tile selection: minimize modeled HBM traffic subject to a VMEM budget.
# -----------------------------------------------------------------------------
def _pick_tiles(m, k_pad, oc_pad, in_bytes, out_bytes, budget, m_align, tile_m_req):
    def footprint(tm, tk, toc):
        patches = 2 * tm * tk * in_bytes                 # double-buffered patch tile
        weights = 2 * 2 * tk * toc * in_bytes            # wmu + wsig, double-buffered
        biases = 2 * 2 * toc * 4
        outs = 2 * 2 * tm * toc * out_bytes              # mu + sig2 output tiles
        accs = 2 * tm * toc * 4                          # f32 scratch accumulators
        interm = tm * tk * in_bytes + 2 * tm * toc * 4   # p*p + pre-cast dot results
        return patches + weights + biases + outs + accs + interm

    def hbm_traffic(tm, tk, toc):
        num_m = -(-m // tm)
        num_oc = oc_pad // toc
        num_k = k_pad // tk
        p_bytes = num_oc * m * k_pad * in_bytes          # patches re-read per OC tile
        if num_oc == 1 and num_k == 1:
            w_bytes = 2 * k_pad * oc_pad * in_bytes      # weights resident across M tiles
        else:
            w_bytes = num_m * 2 * k_pad * oc_pad * in_bytes
        return p_bytes + w_bytes

    tm_top = max(m_align, _round_up(min(tile_m_req, max(m, 1)), m_align))
    tm_cands = []
    t = tm_top
    while True:
        tm_cands.append(t)
        if t <= 128:
            break
        t = max(128, _round_up(t // 2, m_align))

    toc_cands = [d * _LANE for d in _divisors_desc(oc_pad // _LANE)]
    tk_cands = [d * _LANE for d in _divisors_desc(k_pad // _LANE)]

    best_key, best = None, None
    for toc in toc_cands:
        for tk in tk_cands:
            for tm in tm_cands:                          # largest fitting tm per (toc, tk)
                if footprint(tm, tk, toc) > budget:
                    continue
                key = (hbm_traffic(tm, tk, toc), -tm, -(tk * toc))
                if best_key is None or key < best_key:
                    best_key, best = key, (tm, tk, toc)
                break
    if best is None:                                     # pathological budget: minimum tiles
        best = (tm_cands[-1], tk_cands[-1], toc_cands[-1])
    tm, tk, toc = best
    return tm, tk, toc, footprint(tm, tk, toc)


# -----------------------------------------------------------------------------
# Wrapper
# -----------------------------------------------------------------------------
@functools.partial(
    jax.jit,
    static_argnames=("stride", "padding", "dilation", "groups", "tile_m",
                     "compute_dtype", "out_dtype", "output_layout"))
def vbconv2d_forward(x, weight_mu, weight_log_sig2, bias_mu, bias_log_sig2, *,
                     stride=1, padding=0, dilation=1, groups=1,
                     tile_m=1024, compute_dtype=jnp.bfloat16,
                     out_dtype=None, output_layout="NCHW"):
    """Returns (mu, sig2).  output_layout='NHWC' skips the post-kernel transpose
    (two full HBM round trips) and out_dtype=bf16 halves output bytes."""
    if groups != 1:
        # TODO(synk): grouped convolution not implemented.
        raise NotImplementedError("groups > 1 is not supported")

    n, c, h, w = x.shape
    oc, _, kh, kw = weight_mu.shape
    k = c * kh * kw

    compute_dtype = jnp.dtype(compute_dtype)
    out_dtype = jnp.dtype(x.dtype if out_dtype is None else out_dtype)
    in_bytes = compute_dtype.itemsize
    out_bytes = out_dtype.itemsize
    m_align = 16 if in_bytes < 4 else 8

    # im2col directly in the compute dtype (halves patch HBM traffic for bf16).
    patches, oh, ow = _im2col(x.astype(compute_dtype), kh, kw, stride, padding, dilation)
    m = n * oh * ow

    k_pad = _round_up(k, _LANE)
    oc_pad = _round_up(oc, _LANE)

    budget, limit_ceiling = _vmem_budget_and_ceiling()
    tile_m_eff, tile_k_eff, tile_oc_eff, fp = _pick_tiles(
        m, k_pad, oc_pad, in_bytes, out_bytes, budget, m_align, tile_m)
    vmem_limit = int(min(max(2 * fp, 32 << 20), limit_ceiling))
    vmem_limit = max(vmem_limit, fp + (4 << 20))

    m_tot = _round_up(max(m, 1), tile_m_eff)

    # ---- build padded operands ----------------------------------------------
    patches = jnp.pad(patches, ((0, m_tot - m), (0, k_pad - k)))

    wmu = weight_mu.reshape(oc, k).T                         # (K, OC)
    wsig = jnp.exp(weight_log_sig2).reshape(oc, k).T         # (K, OC)
    wmu = jnp.pad(wmu, ((0, k_pad - k), (0, oc_pad - oc))).astype(compute_dtype)
    wsig = jnp.pad(wsig, ((0, k_pad - k), (0, oc_pad - oc))).astype(compute_dtype)

    if bias_mu is None:
        bmu_vec = jnp.zeros((oc,), jnp.float32)
        bsig_vec = jnp.zeros((oc,), jnp.float32)
    else:
        bmu_vec = bias_mu.astype(jnp.float32)
        bsig_vec = jnp.exp(bias_log_sig2).astype(jnp.float32)
    bmu = jnp.pad(bmu_vec.reshape(1, oc), ((0, 0), (0, oc_pad - oc)))
    bsig = jnp.pad(bsig_vec.reshape(1, oc), ((0, 0), (0, oc_pad - oc)))

    grid = (m_tot // tile_m_eff, oc_pad // tile_oc_eff, k_pad // tile_k_eff)
    precision = (lax.Precision.HIGHEST
                 if compute_dtype == jnp.dtype(jnp.float32) else None)
    kernel = functools.partial(_vbconv_kernel, precision=precision)

    mu_flat, sig_flat = pl.pallas_call(
        kernel,
        out_shape=(jax.ShapeDtypeStruct((m_tot, oc_pad), out_dtype),
                   jax.ShapeDtypeStruct((m_tot, oc_pad), out_dtype)),
        grid_spec=pltpu.PrefetchScalarGridSpec(
            num_scalar_prefetch=0,
            grid=grid,
            in_specs=[
                pl.BlockSpec((tile_m_eff, tile_k_eff), lambda i, j, kk: (i, kk)),
                pl.BlockSpec((tile_k_eff, tile_oc_eff), lambda i, j, kk: (kk, j)),
                pl.BlockSpec((tile_k_eff, tile_oc_eff), lambda i, j, kk: (kk, j)),
                pl.BlockSpec((1, tile_oc_eff), lambda i, j, kk: (0, j)),
                pl.BlockSpec((1, tile_oc_eff), lambda i, j, kk: (0, j)),
            ],
            out_specs=[
                pl.BlockSpec((tile_m_eff, tile_oc_eff), lambda i, j, kk: (i, j)),
                pl.BlockSpec((tile_m_eff, tile_oc_eff), lambda i, j, kk: (i, j)),
            ],
            scratch_shapes=[
                pltpu.VMEM((tile_m_eff, tile_oc_eff), jnp.float32),
                pltpu.VMEM((tile_m_eff, tile_oc_eff), jnp.float32),
            ]),
        compiler_params=pltpu.CompilerParams(
            dimension_semantics=("parallel", "arbitrary", "arbitrary"),
            vmem_limit_bytes=vmem_limit),
    )(patches, wmu, wsig, bmu, bsig)

    mu = mu_flat[:m, :oc].reshape(n, oh, ow, oc)
    sig2 = sig_flat[:m, :oc].reshape(n, oh, ow, oc)
    if output_layout == "NCHW":
        mu = mu.transpose(0, 3, 1, 2)
        sig2 = sig2.transpose(0, 3, 1, 2)
    return mu, sig2


# -----------------------------------------------------------------------------
# Deterministic parameter init (mirrors VBConv2d.reset_parameters)
# -----------------------------------------------------------------------------
def init_vbconv_params(key, in_channels, out_channels, kernel_size):
    kh, kw = kernel_size
    fan_in = in_channels * kh * kw
    nn = in_channels * kh * kw
    k_wmu, k_bmu = jax.random.split(key)
    a = math.sqrt(5) / math.sqrt(nn)
    gain = math.sqrt(2.0 / (1.0 + a * a))
    bound_w = gain * math.sqrt(3.0 / fan_in)
    weight_mu = jax.random.uniform(
        k_wmu, (out_channels, in_channels, kh, kw),
        minval=-bound_w, maxval=bound_w, dtype=jnp.float32)
    weight_log_sig2 = jnp.full((out_channels, in_channels, kh, kw), -10.0, jnp.float32)
    bound_b = 1.0 / math.sqrt(fan_in)
    bias_mu = jax.random.uniform(k_bmu, (out_channels,),
                                 minval=-bound_b, maxval=bound_b, dtype=jnp.float32)
    bias_log_sig2 = jnp.full((out_channels,), -10.0, jnp.float32)
    return weight_mu, weight_log_sig2, bias_mu, bias_log_sig2


# -----------------------------------------------------------------------------
# Pure-JAX reference (lax conv) for correctness checks
# -----------------------------------------------------------------------------
def _ref_conv(x, w, stride, padding, dilation):
    dn = jax.lax.conv_dimension_numbers(x.shape, w.shape, ("NCHW", "OIHW", "NCHW"))
    return jax.lax.conv_general_dilated(
        x, w, window_strides=(stride, stride),
        padding=[(padding, padding), (padding, padding)],
        rhs_dilation=(dilation, dilation), dimension_numbers=dn,
        precision=lax.Precision.HIGHEST)


def _ref_forward(x, weight_mu, weight_log_sig2, bias_mu, bias_log_sig2,
                 stride, padding, dilation):
    mu = _ref_conv(x, weight_mu, stride, padding, dilation) + bias_mu[None, :, None, None]
    sig2 = (_ref_conv(x * x, jnp.exp(weight_log_sig2), stride, padding, dilation)
            + jnp.exp(bias_log_sig2)[None, :, None, None])
    return mu, sig2


if __name__ == "__main__":
    key = jax.random.PRNGKey(0)
    k_x, k_p = jax.random.split(key)

    # Small shapes: batch=2, in_channels=4, spatial=16x16, out_channels=8, 3x3 kernel.
    N, C, H, W = 2, 4, 16, 16
    OC, KH, KW = 8, 3, 3
    stride, padding, dilation = 1, 1, 1

    x = jax.random.normal(k_x, (N, C, H, W), dtype=jnp.float32)
    weight_mu, weight_log_sig2, bias_mu, bias_log_sig2 = init_vbconv_params(
        k_p, C, OC, (KH, KW))

    # --- default path: bf16 operands, f32 MXU accumulation --------------------
    mu, sig2 = vbconv2d_forward(
        x, weight_mu, weight_log_sig2, bias_mu, bias_log_sig2,
        stride=stride, padding=padding, dilation=dilation)
    jax.block_until_ready((mu, sig2))
    assert mu.shape == (N, OC, H, W) and sig2.shape == (N, OC, H, W)

    # Reference that mirrors the kernel's bf16 operand rounding exactly.
    xb = x.astype(jnp.bfloat16).astype(jnp.float32)
    wb = weight_mu.astype(jnp.bfloat16).astype(jnp.float32)
    ws = jnp.exp(weight_log_sig2).astype(jnp.bfloat16).astype(jnp.float32)
    x2b = (xb.astype(jnp.bfloat16) * xb.astype(jnp.bfloat16)).astype(jnp.float32)
    mu_ref_bf = _ref_conv(xb, wb, stride, padding, dilation) + bias_mu[None, :, None, None]
    sig2_ref_bf = (_ref_conv(x2b, ws, stride, padding, dilation)
                   + jnp.exp(bias_log_sig2)[None, :, None, None])
    assert jnp.allclose(mu, mu_ref_bf, rtol=1e-2, atol=1e-3)
    assert jnp.allclose(sig2, sig2_ref_bf, rtol=1e-2, atol=1e-3)

    # --- full-precision path vs exact lax reference ----------------------------
    mu32, sig2_32 = vbconv2d_forward(
        x, weight_mu, weight_log_sig2, bias_mu, bias_log_sig2,
        stride=stride, padding=padding, dilation=dilation,
        compute_dtype=jnp.float32)
    jax.block_until_ready((mu32, sig2_32))
    mu_ref, sig2_ref = _ref_forward(
        x, weight_mu, weight_log_sig2, bias_mu, bias_log_sig2,
        stride, padding, dilation)
    assert jnp.allclose(mu32, mu_ref, rtol=2e-3, atol=1e-5)
    assert jnp.allclose(sig2_32, sig2_ref, rtol=2e-3, atol=1e-5)

    print("KERNEL_OK")
</pallas_src>

<mosaic_0001>
module attributes {stable_mosaic.version = 11 : i64} {
  func.func @_vbconv_kernel(%arg0: i32, %arg1: i32, %arg2: i32, %arg3: memref<512x128xbf16, #tpu.memory_space<vmem>>, %arg4: memref<128x128xbf16, #tpu.memory_space<vmem>>, %arg5: memref<128x128xbf16, #tpu.memory_space<vmem>>, %arg6: memref<1x128xf32, #tpu.memory_space<vmem>>, %arg7: memref<1x128xf32, #tpu.memory_space<vmem>>, %arg8: memref<512x128xf32, #tpu.memory_space<vmem>>, %arg9: memref<512x128xf32, #tpu.memory_space<vmem>>, %arg10: memref<512x128xf32, #tpu.memory_space<vmem>>, %arg11: memref<512x128xf32, #tpu.memory_space<vmem>>) attributes {dimension_semantics = [#tpu.dimension_semantics<parallel>, #tpu.dimension_semantics<arbitrary>, #tpu.dimension_semantics<arbitrary>], iteration_bounds = array<i64: 1, 1, 1>, scalar_prefetch = 0 : i64, scratch_operands = 2 : i64, tpu.core_type = #tpu.core_type<tc>, window_params = [{transform_indices = @transform_0, window_bounds = array<i64: 512, 128>}, {transform_indices = @transform_1, window_bounds = array<i64: 128, 128>}, {transform_indices = @transform_2, window_bounds = array<i64: 128, 128>}, {transform_indices = @transform_3, window_bounds = array<i64: 1, 128>}, {transform_indices = @transform_4, window_bounds = array<i64: 1, 128>}, {transform_indices = @transform_5, window_bounds = array<i64: 512, 128>}, {transform_indices = @transform_6, window_bounds = array<i64: 512, 128>}]} {
    %c0_i32 = arith.constant 0 : i32
    %0 = arith.cmpi eq, %arg2, %c0_i32 : i32
    %1 = arith.extui %0 : i1 to i32
    %c0_i32_0 = arith.constant 0 : i32
    %2 = arith.cmpi ne, %1, %c0_i32_0 : i32
    scf.if %2 {
      %cst_17 = arith.constant 0.000000e+00 : f32
      %18 = vector.broadcast %cst_17 : f32 to vector<512x128xf32>
      %c0_18 = arith.constant 0 : index
      %c0_19 = arith.constant 0 : index
      %19 = vector.load %arg10[%c0_18, %c0_19] : memref<512x128xf32, #tpu.memory_space<vmem>>, vector<512x128xf32>
      tpu.vector_store %arg10[%c0_18, %c0_19], %18 {strides = array<i32>} : memref<512x128xf32, #tpu.memory_space<vmem>>, vector<512x128xf32>,
      %cst_20 = arith.constant 0.000000e+00 : f32
      %20 = vector.broadcast %cst_20 : f32 to vector<512x128xf32>
      %c0_21 = arith.constant 0 : index
      %c0_22 = arith.constant 0 : index
      %21 = vector.load %arg11[%c0_21, %c0_22] : memref<512x128xf32, #tpu.memory_space<vmem>>, vector<512x128xf32>
      tpu.vector_store %arg11[%c0_21, %c0_22], %20 {strides = array<i32>} : memref<512x128xf32, #tpu.memory_space<vmem>>, vector<512x128xf32>,
    } else {
    }
    %c0 = arith.constant 0 : index
    %c0_1 = arith.constant 0 : index
    %3 = vector.load %arg3[%c0, %c0_1] : memref<512x128xbf16, #tpu.memory_space<vmem>>, vector<512x128xbf16>
    %4 = arith.mulf %3, %3 : vector<512x128xbf16>
    %c0_2 = arith.constant 0 : index
    %c0_3 = arith.constant 0 : index
    %5 = vector.load %arg10[%c0_2, %c0_3] : memref<512x128xf32, #tpu.memory_space<vmem>>, vector<512x128xf32>
    %c0_4 = arith.constant 0 : index
    %c0_5 = arith.constant 0 : index
    %6 = vector.load %arg4[%c0_4, %c0_5] : memref<128x128xbf16, #tpu.memory_space<vmem>>, vector<128x128xbf16>
    %cst = arith.constant dense<0.000000e+00> : vector<512x128xf32>
    %7 = tpu.matmul %3, %6, %cst {dimension_numbers = #tpu.dot_dimension_numbers<[1], [0], [0], [1], [0, 0, 1, 1], [], []>} : vector<512x128xbf16>, vector<128x128xbf16>, vector<512x128xf32> -> vector<512x128xf32>
    %8 = arith.addf %5, %7 : vector<512x128xf32>
    %c0_6 = arith.constant 0 : index
    %c0_7 = arith.constant 0 : index
    %9 = vector.load %arg10[%c0_6, %c0_7] : memref<512x128xf32, #tpu.memory_space<vmem>>, vector<512x128xf32>
    tpu.vector_store %arg10[%c0_6, %c0_7], %8 {strides = array<i32>} : memref<512x128xf32, #tpu.memory_space<vmem>>, vector<512x128xf32>,
    %c0_8 = arith.constant 0 : index
    %c0_9 = arith.constant 0 : index
    %10 = vector.load %arg11[%c0_8, %c0_9] : memref<512x128xf32, #tpu.memory_space<vmem>>, vector<512x128xf32>
    %c0_10 = arith.constant 0 : index
    %c0_11 = arith.constant 0 : index
    %11 = vector.load %arg5[%c0_10, %c0_11] : memref<128x128xbf16, #tpu.memory_space<vmem>>, vector<128x128xbf16>
    %cst_12 = arith.constant dense<0.000000e+00> : vector<512x128xf32>
    %12 = tpu.matmul %4, %11, %cst_12 {dimension_numbers = #tpu.dot_dimension_numbers<[1], [0], [0], [1], [0, 0, 1, 1], [], []>} : vector<512x128xbf16>, vector<128x128xbf16>, vector<512x128xf32> -> vector<512x128xf32>
    %13 = arith.addf %10, %12 : vector<512x128xf32>
    %c0_13 = arith.constant 0 : index
    %c0_14 = arith.constant 0 : index
    %14 = vector.load %arg11[%c0_13, %c0_14] : memref<512x128xf32, #tpu.memory_space<vmem>>, vector<512x128xf32>
    tpu.vector_store %arg11[%c0_13, %c0_14], %13 {strides = array<i32>} : memref<512x128xf32, #tpu.memory_space<vmem>>, vector<512x128xf32>,
    %c0_i32_15 = arith.constant 0 : i32
    %15 = arith.cmpi eq, %arg2, %c0_i32_15 : i32
    %16 = arith.extui %15 : i1 to i32
    %c0_i32_16 = arith.constant 0 : i32
    %17 = arith.cmpi ne, %16, %c0_i32_16 : i32
    scf.if %17 {
      %c0_17 = arith.constant 0 : index
      %c0_18 = arith.constant 0 : index
      %18 = vector.load %arg10[%c0_17, %c0_18] : memref<512x128xf32, #tpu.memory_space<vmem>>, vector<512x128xf32>
      %c0_19 = arith.constant 0 : index
      %c0_20 = arith.constant 0 : index
      %19 = vector.load %arg6[%c0_19, %c0_20] : memref<1x128xf32, #tpu.memory_space<vmem>>, vector<1x128xf32>
      %20 = vector.broadcast %19 : vector<1x128xf32> to vector<512x128xf32>
      %21 = arith.addf %18, %20 : vector<512x128xf32>
      %c0_21 = arith.constant 0 : index
      %c0_22 = arith.constant 0 : index
      %22 = vector.load %arg8[%c0_21, %c0_22] : memref<512x128xf32, #tpu.memory_space<vmem>>, vector<512x128xf32>
      tpu.vector_store %arg8[%c0_21, %c0_22], %21 {strides = array<i32>} : memref<512x128xf32, #tpu.memory_space<vmem>>, vector<512x128xf32>,
      %c0_23 = arith.constant 0 : index
      %c0_24 = arith.constant 0 : index
      %23 = vector.load %arg11[%c0_23, %c0_24] : memref<512x128xf32, #tpu.memory_space<vmem>>, vector<512x128xf32>
      %c0_25 = arith.constant 0 : index
      %c0_26 = arith.constant 0 : index
      %24 = vector.load %arg7[%c0_25, %c0_26] : memref<1x128xf32, #tpu.memory_space<vmem>>, vector<1x128xf32>
      %25 = vector.broadcast %24 : vector<1x128xf32> to vector<512x128xf32>
      %26 = arith.addf %23, %25 : vector<512x128xf32>
      %c0_27 = arith.constant 0 : index
      %c0_28 = arith.constant 0 : index
      %27 = vector.load %arg9[%c0_27, %c0_28] : memref<512x128xf32, #tpu.memory_space<vmem>>, vector<512x128xf32>
      tpu.vector_store %arg9[%c0_27, %c0_28], %26 {strides = array<i32>} : memref<512x128xf32, #tpu.memory_space<vmem>>, vector<512x128xf32>,
    } else {
    }
    return
  }
  func.func @transform_0(%arg0: i32, %arg1: i32, %arg2: i32) -> (i32, i32) {
    %c0_i32 = arith.constant 0 : i32
    return %arg0, %arg2 : i32, i32
  }
  func.func @transform_1(%arg0: i32, %arg1: i32, %arg2: i32) -> (i32, i32) {
    %c0_i32 = arith.constant 0 : i32
    return %arg2, %arg1 : i32, i32
  }
  func.func @transform_2(%arg0: i32, %arg1: i32, %arg2: i32) -> (i32, i32) {
    %c0_i32 = arith.constant 0 : i32
    return %arg2, %arg1 : i32, i32
  }
  func.func @transform_3(%arg0: i32, %arg1: i32, %arg2: i32) -> (i32, i32) {
    %c0_i32 = arith.constant 0 : i32
    %c0_i32_0 = arith.constant 0 : i32
    return %c0_i32, %arg1 : i32, i32
  }
  func.func @transform_4(%arg0: i32, %arg1: i32, %arg2: i32) -> (i32, i32) {
    %c0_i32 = arith.constant 0 : i32
    %c0_i32_0 = arith.constant 0 : i32
    return %c0_i32, %arg1 : i32, i32
  }
  func.func @transform_5(%arg0: i32, %arg1: i32, %arg2: i32) -> (i32, i32) {
    %c0_i32 = arith.constant 0 : i32
    return %arg0, %arg1 : i32, i32
  }
  func.func @transform_6(%arg0: i32, %arg1: i32, %arg2: i32) -> (i32, i32) {
    %c0_i32 = arith.constant 0 : i32
    return %arg0, %arg1 : i32, i32
  }
}

</mosaic_0001>

<bundles_post_ra>
// kernel: vbconv2d_forward.1
= control target key start
LH: loop header
LB: loop body
LE: loop exit
PB: predicated region body
PF: predicated region fallthrough
CT: control target
= control target key end

     0   :  { %s3333_s1 = inlined_call_operand.vmem [shape: bf16[128,128], index: 1, kind: input, shape index: {}]   ;;  %s3334_s2 = inlined_call_operand.vmem [shape: bf16[128,128], index: 2, kind: input, shape index: {}]   ;;  %s3335_s0 = inlined_call_operand.vmem [shape: bf16[512,128], index: 0, kind: input, shape index: {}]   ;;  %s3336_s3 = inlined_call_operand.vmem [shape: f32[1,128], index: 3, kind: input, shape index: {}]   ;;  %s3337_s4 = inlined_call_operand.vmem [shape: f32[1,128], index: 4, kind: input, shape index: {}]   ;;  %s3338_s5 = inlined_call_operand.vmem [shape: f32[512,128], index: 5, kind: output, shape index: {0}]   ;;  %s3339_s6 = inlined_call_operand.vmem [shape: f32[512,128], index: 6, kind: output, shape index: {1}]  }
   0x1   :  { %v2488_v0 = vld [vmem:[%s3333_s1 + $0x38] sm:$0xff]   ;;  %v2490_v2 = vld [vmem:[%s3333_s1 + $0x30] sm:$0xff]   ;;  %v2492_v4 = vld [vmem:[%s3333_s1 + $0x28] sm:$0xff]  }
   0x2   :  { %v2489_v1 = vld [vmem:[%s3334_s2 + $0x38] sm:$0xff]   ;;  %2328 = vmatprep.subr.bf16.mxu0 %v2488_v0  ;;  %v2491_v3 = vld [vmem:[%s3334_s2 + $0x30] sm:$0xff]   ;;  %v2493_v5 = vld [vmem:[%s3334_s2 + $0x28] sm:$0xff]  }
   0x3   :  { %2408 = vmatprep.subr.bf16.mxu1 %v2489_v1  ;;  %2329 = vmatpush3.bf16.msra.mxu0 %v2488_v0  ;;  %v2494_v6 = vld [vmem:[%s3333_s1 + $0x20] sm:$0xff]   ;;  %v2496_v8 = vld [vmem:[%s3333_s1 + $0x18] sm:$0xff]   ;;  %v2498_v10 = vld [vmem:[%s3333_s1 + $0x10] sm:$0xff]  }
   0x4   :  { %2409 = vmatpush3.bf16.msra.mxu1 %v2489_v1  ;;  %2330 = vmatprep.subr.bf16.mxu0 %v2490_v2  ;;  %v2495_v7 = vld [vmem:[%s3334_s2 + $0x20] sm:$0xff]   ;;  %v2497_v9 = vld [vmem:[%s3334_s2 + $0x18] sm:$0xff]   ;;  %v2499_v13 = vld [vmem:[%s3334_s2 + $0x10] sm:$0xff]  }
   0x5   :  { %2410 = vmatprep.subr.bf16.mxu1 %v2491_v3  ;;  %v155_v11 = vld [vmem:[%s3335_s0] sm:$0xf]  ;;  %v156_v12 = vld [vmem:[%s3335_s0 + $0x4] sm:$0xf]  ;;  %v2500_v18 = vld [vmem:[%s3333_s1 + $0x8] sm:$0xff]  }
   0x6   :  { %v2166_v14 = vcombine.low %v155_v11, %v156_v12  ;;  %v219_v15 = vmul.bf16 %v155_v11, %v155_v11  ;;  %v220_v16 = vmul.bf16 %v156_v12, %v156_v12  ;;  %v2501_v19 = vld [vmem:[%s3334_s2 + $0x8] sm:$0xff]   ;;  %v2502_v20 = vld [vmem:[%s3333_s1] sm:$0xff]   ;;  %v159_v24 = vld [vmem:[%s3335_s0 + $0x10] sm:$0xf] }
   0x7   :  { %2331 = vmatpush3.bf16.msra.mxu0 %v2490_v2  ;;  %v157_v21 = vld [vmem:[%s3335_s0 + $0x8] sm:$0xf]  ;;  %v158_v22 = vld [vmem:[%s3335_s0 + $0xc] sm:$0xf]  ;;  %v2503_v23 = vld [vmem:[%s3334_s2] sm:$0xff]   ;;  %v223_v28 = vmul.bf16 %v159_v24, %v159_v24 }
   0x8   :  { %2411 = vmatpush3.bf16.msra.mxu1 %v2491_v3  ;;  %2332 = vmatprep.subr.bf16.mxu0 %v2492_v4  ;;  %v2206_v17 = vcombine.low %v219_v15, %v220_v16  ;;  %v160_v25 = vld [vmem:[%s3335_s0 + $0x14] sm:$0xf]  ;;  %v221_v26 = vmul.bf16 %v157_v21, %v157_v21  ;;  %v222_v27 = vmul.bf16 %v158_v22, %v158_v22  ;;  %v161_v34 = vld [vmem:[%s3335_s0 + $0x18] sm:$0xf]  ;;  %v162_v35 = vld [vmem:[%s3335_s0 + $0x1c] sm:$0xf] }
   0x9   :  { %2412 = vmatprep.subr.bf16.mxu1 %v2493_v5  ;;  %2344 = vmatprep.mubr.bf16.mxu0 %v2166_v14  ;;  %v224_v29 = vmul.bf16 %v160_v25, %v160_v25  ;;  %v2167_v30 = vcombine.low %v157_v21, %v158_v22  ;;  %v2168_v32 = vcombine.low %v159_v24, %v160_v25  ;;  %v163_v36 = vld [vmem:[%s3335_s0 + $0x20] sm:$0xf]  ;;  %v164_v37 = vld [vmem:[%s3335_s0 + $0x24] sm:$0xf]  ;;  %v165_v46 = vld [vmem:[%s3335_s0 + $0x28] sm:$0xf] }
   0xa   :  { %2424 = vmatprep.mubr.bf16.mxu1 %v2206_v17  ;;  %v2207_v31 = vcombine.low %v221_v26, %v222_v27  ;;  %v225_v38 = vmul.bf16 %v161_v34, %v161_v34  ;;  %v226_v39 = vmul.bf16 %v162_v35, %v162_v35  ;;  %v227_v40 = vmul.bf16 %v163_v36, %v163_v36  ;;  %v166_v47 = vld [vmem:[%s3335_s0 + $0x2c] sm:$0xf]  ;;  %v167_v48 = vld [vmem:[%s3335_s0 + $0x30] sm:$0xf]  ;;  %v168_v49 = vld [vmem:[%s3335_s0 + $0x34] sm:$0xf] }
   0xb   :  { %2333 = vmatpush3.bf16.msra.mxu0 %v2492_v4  ;;  %v2208_v33 = vcombine.low %v223_v28, %v224_v29  ;;  %v228_v41 = vmul.bf16 %v164_v37, %v164_v37  ;;  %v2169_v42 = vcombine.low %v161_v34, %v162_v35  ;;  %v2170_v44 = vcombine.low %v163_v36, %v164_v37  ;;  %v169_v58 = vld [vmem:[%s3335_s0 + $0x38] sm:$0xf]  ;;  %v170_v59 = vld [vmem:[%s3335_s0 + $0x3c] sm:$0xf]  ;;  %v171_v60 = vld [vmem:[%s3335_s0 + $0x40] sm:$0xf] }
   0xc   :  { %2413 = vmatpush3.bf16.msra.mxu1 %v2493_v5  ;;  %2334 = vmatprep.subr.bf16.mxu0 %v2494_v6  ;;  %v2209_v43 = vcombine.low %v225_v38, %v226_v39  ;;  %v229_v50 = vmul.bf16 %v165_v46, %v165_v46  ;;  %v230_v51 = vmul.bf16 %v166_v47, %v166_v47  ;;  %v172_v61 = vld [vmem:[%s3335_s0 + $0x44] sm:$0xf] }
   0xd   :  { %2414 = vmatprep.subr.bf16.mxu1 %v2495_v7  ;;  %v2210_v45 = vcombine.low %v227_v40, %v228_v41  ;;  %v231_v52 = vmul.bf16 %v167_v48, %v167_v48  ;;  %v232_v53 = vmul.bf16 %v168_v49, %v168_v49  ;;  %v2171_v54 = vcombine.low %v165_v46, %v166_v47  ;;  %v180_v21 = vld [vmem:[%s3335_s0 + $0x64] sm:$0xf] }
   0xe   :  { %v2211_v55 = vcombine.low %v229_v50, %v230_v51  ;;  %v2172_v56 = vcombine.low %v167_v48, %v168_v49  ;;  %v233_v62 = vmul.bf16 %v169_v58, %v169_v58  ;;  %v234_v63 = vmul.bf16 %v170_v59, %v170_v59 }
   0xf   :  { %2335 = vmatpush3.bf16.msra.mxu0 %v2494_v6  ;;  %v2212_v57 = vcombine.low %v231_v52, %v232_v53  ;;  %v235_v0 = vmul.bf16 %v171_v60, %v171_v60  ;;  %v236_v1 = vmul.bf16 %v172_v61, %v172_v61  ;;  %v2173_v2 = vcombine.low %v169_v58, %v170_v59  ;;  %v173_v6 = vld [vmem:[%s3335_s0 + $0x48] sm:$0xf] }
  0x10   :  { %2415 = vmatpush3.bf16.msra.mxu1 %v2495_v7  ;;  %2336 = vmatprep.subr.bf16.mxu0 %v2496_v8  ;;  %v2213_v3 = vcombine.low %v233_v62, %v234_v63  ;;  %v2174_v4 = vcombine.low %v171_v60, %v172_v61  ;;  %v174_v7 = vld [vmem:[%s3335_s0 + $0x4c] sm:$0xf]  ;;  %v244_v25 = vmul.bf16 %v180_v21, %v180_v21 }
  0x11   :  { %2416 = vmatprep.subr.bf16.mxu1 %v2497_v9  ;;  %v2214_v5 = vcombine.low %v235_v0, %v236_v1  ;;  %v238_v11 = vmul.bf16 %v174_v7, %v174_v7  ;;  %v2175_v14 = vcombine.low %v173_v6, %v174_v7 }
  0x13   :  { %2337 = vmatpush3.bf16.msra.mxu0 %v2496_v8  ;;  %v175_v8 = vld [vmem:[%s3335_s0 + $0x50] sm:$0xf] }
  0x14   :  { %2417 = vmatpush3.bf16.msra.mxu1 %v2497_v9  ;;  %2338 = vmatprep.subr.bf16.mxu0 %v2498_v10  ;;  %v176_v9 = vld [vmem:[%s3335_s0 + $0x54] sm:$0xf]  ;;  %v239_v12 = vmul.bf16 %v175_v8, %v175_v8 }
  0x15   :  { %2418 = vmatprep.subr.bf16.mxu1 %v2499_v13  ;;  %v2176_v16 = vcombine.low %v175_v8, %v176_v9 }
  0x17   :  { %2339 = vmatpush3.bf16.msra.mxu0 %v2498_v10  ;;  %v237_v10 = vmul.bf16 %v173_v6, %v173_v6 }
  0x18   :  { %2419 = vmatpush3.bf16.msra.mxu1 %v2499_v13  ;;  %2340 = vmatprep.subr.bf16.mxu0 %v2500_v18  ;;  %v240_v13 = vmul.bf16 %v176_v9, %v176_v9 }
  0x19   :  { %2420 = vmatprep.subr.bf16.mxu1 %v2501_v19  ;;  %v2215_v15 = vcombine.low %v237_v10, %v238_v11 }
  0x1a   :  { %v2216_v17 = vcombine.low %v239_v12, %v240_v13 }
  0x1b   :  { %2341 = vmatpush3.bf16.msra.mxu0 %v2500_v18  ;;  %v177_v18 = vld [vmem:[%s3335_s0 + $0x58] sm:$0xf] }
  0x1c   :  { %2421 = vmatpush3.bf16.msra.mxu1 %v2501_v19  ;;  %2342 = vmatprep.subr.bf16.mxu0 %v2502_v20  ;;  %v178_v19 = vld [vmem:[%s3335_s0 + $0x5c] sm:$0xf]  ;;  %v241_v22 = vmul.bf16 %v177_v18, %v177_v18 }
  0x1d   :  { %2422 = vmatprep.subr.bf16.mxu1 %v2503_v23  ;;  %v2177_v26 = vcombine.low %v177_v18, %v178_v19 }
  0x1f   :  { %2343 = vmatpush3.bf16.msra.mxu0 %v2502_v20  ;;  %v179_v20 = vld [vmem:[%s3335_s0 + $0x60] sm:$0xf] }
  0x20   :  { %2423 = vmatpush3.bf16.msra.mxu1 %v2503_v23  ;;  %v242_v23 = vmul.bf16 %v178_v19, %v178_v19  ;;  %v243_v24 = vmul.bf16 %v179_v20, %v179_v20  ;;  %v2178_v28 = vcombine.low %v179_v20, %v180_v21 }
  0x22   :  { %2345 = vmatmul.mubr.bf16.vlgmr.msra.gmra.mxu0 %v2167_v30  ;;  %v2217_v27 = vcombine.low %v241_v22, %v242_v23  ;;  %v2218_v29 = vcombine.low %v243_v24, %v244_v25  ;;  %v181_v30 = vld [vmem:[%s3335_s0 + $0x68] sm:$0xf] }
  0x23   :  { %2425 = vmatmul.mubr.bf16.vlgmr.msra.gmra.mxu1 %v2207_v31  ;;  %2348 = vmatprep.mubr.bf16.mxu0 %v2168_v32  ;;  %v182_v31 = vld [vmem:[%s3335_s0 + $0x6c] sm:$0xf]  ;;  %v183_v32 = vld [vmem:[%s3335_s0 + $0x70] sm:$0xf]  ;;  %v245_v34 = vmul.bf16 %v181_v30, %v181_v30 }
  0x24   :  { %2428 = vmatprep.mubr.bf16.mxu1 %v2208_v33  ;;  %v184_v33 = vld [vmem:[%s3335_s0 + $0x74] sm:$0xf]  ;;  %v246_v35 = vmul.bf16 %v182_v31, %v182_v31  ;;  %v247_v36 = vmul.bf16 %v183_v32, %v183_v32  ;;  %v2179_v38 = vcombine.low %v181_v30, %v182_v31 }
  0x25   :  { %v248_v37 = vmul.bf16 %v184_v33, %v184_v33  ;;  %v2180_v40 = vcombine.low %v183_v32, %v184_v33 }
  0x26   :  { %v2219_v39 = vcombine.low %v245_v34, %v246_v35 }
  0x27   :  { %v2220_v41 = vcombine.low %v247_v36, %v248_v37 }
  0x2a   :  { %2349 = vmatmul.mubr.bf16.gmra.mxu0 %v2169_v42  ;;  %v185_v42 = vld [vmem:[%s3335_s0 + $0x78] sm:$0xf] }
  0x2b   :  { %2429 = vmatmul.mubr.bf16.gmra.mxu1 %v2209_v43  ;;  %2352 = vmatprep.mubr.bf16.mxu0 %v2170_v44  ;;  %v186_v43 = vld [vmem:[%s3335_s0 + $0x7c] sm:$0xf]  ;;  %v187_v44 = vld [vmem:[%s3335_s0 + $0x80] sm:$0xf]  ;;  %v249_v46 = vmul.bf16 %v185_v42, %v185_v42 }
  0x2c   :  { %2432 = vmatprep.mubr.bf16.mxu1 %v2210_v45  ;;  %v188_v45 = vld [vmem:[%s3335_s0 + $0x84] sm:$0xf]  ;;  %v250_v47 = vmul.bf16 %v186_v43, %v186_v43  ;;  %v251_v48 = vmul.bf16 %v187_v44, %v187_v44  ;;  %v2181_v50 = vcombine.low %v185_v42, %v186_v43 }
  0x2d   :  { %v252_v49 = vmul.bf16 %v188_v45, %v188_v45  ;;  %v2182_v52 = vcombine.low %v187_v44, %v188_v45 }
  0x2e   :  { %v2221_v51 = vcombine.low %v249_v46, %v250_v47 }
  0x2f   :  { %v2222_v53 = vcombine.low %v251_v48, %v252_v49 }
  0x32   :  { %2353 = vmatmul.mubr.bf16.gmra.mxu0 %v2171_v54  ;;  %v189_v54 = vld [vmem:[%s3335_s0 + $0x88] sm:$0xf] }
  0x33   :  { %2433 = vmatmul.mubr.bf16.gmra.mxu1 %v2211_v55  ;;  %2356 = vmatprep.mubr.bf16.mxu0 %v2172_v56  ;;  %v190_v55 = vld [vmem:[%s3335_s0 + $0x8c] sm:$0xf]  ;;  %v191_v56 = vld [vmem:[%s3335_s0 + $0x90] sm:$0xf]  ;;  %v253_v58 = vmul.bf16 %v189_v54, %v189_v54 }
  0x34   :  { %2436 = vmatprep.mubr.bf16.mxu1 %v2212_v57  ;;  %v192_v57 = vld [vmem:[%s3335_s0 + $0x94] sm:$0xf]  ;;  %v254_v59 = vmul.bf16 %v190_v55, %v190_v55  ;;  %v255_v60 = vmul.bf16 %v191_v56, %v191_v56  ;;  %v2183_v62 = vcombine.low %v189_v54, %v190_v55 }
  0x35   :  { %v256_v61 = vmul.bf16 %v192_v57, %v192_v57  ;;  %v2184_v0 = vcombine.low %v191_v56, %v192_v57 }
  0x36   :  { %v2223_v63 = vcombine.low %v253_v58, %v254_v59 }
  0x37   :  { %v2224_v1 = vcombine.low %v255_v60, %v256_v61 }
  0x3a   :  { %2357 = vmatmul.mubr.bf16.gmra.mxu0 %v2173_v2  ;;  %v193_v2 = vld [vmem:[%s3335_s0 + $0x98] sm:$0xf] }
  0x3b   :  { %2437 = vmatmul.mubr.bf16.gmra.mxu1 %v2213_v3  ;;  %2360 = vmatprep.mubr.bf16.mxu0 %v2174_v4  ;;  %v194_v3 = vld [vmem:[%s3335_s0 + $0x9c] sm:$0xf]  ;;  %v195_v4 = vld [vmem:[%s3335_s0 + $0xa0] sm:$0xf]  ;;  %v257_v6 = vmul.bf16 %v193_v2, %v193_v2 }
  0x3c   :  { %2440 = vmatprep.mubr.bf16.mxu1 %v2214_v5  ;;  %v196_v5 = vld [vmem:[%s3335_s0 + $0xa4] sm:$0xf]  ;;  %v258_v7 = vmul.bf16 %v194_v3, %v194_v3  ;;  %v259_v8 = vmul.bf16 %v195_v4, %v195_v4  ;;  %v2185_v10 = vcombine.low %v193_v2, %v194_v3 }
  0x3d   :  { %v260_v9 = vmul.bf16 %v196_v5, %v196_v5  ;;  %v2186_v12 = vcombine.low %v195_v4, %v196_v5 }
  0x3e   :  { %v2225_v11 = vcombine.low %v257_v6, %v258_v7 }
  0x3f   :  { %v2226_v13 = vcombine.low %v259_v8, %v260_v9 }
  0x42   :  { %2361 = vmatmul.mubr.bf16.gmra.mxu0 %v2175_v14  ;;  %v197_v14 = vld [vmem:[%s3335_s0 + $0xa8] sm:$0xf] }
  0x43   :  { %2441 = vmatmul.mubr.bf16.gmra.mxu1 %v2215_v15  ;;  %2364 = vmatprep.mubr.bf16.mxu0 %v2176_v16  ;;  %v198_v15 = vld [vmem:[%s3335_s0 + $0xac] sm:$0xf]  ;;  %v199_v16 = vld [vmem:[%s3335_s0 + $0xb0] sm:$0xf]  ;;  %v261_v18 = vmul.bf16 %v197_v14, %v197_v14 }
  0x44   :  { %2444 = vmatprep.mubr.bf16.mxu1 %v2216_v17  ;;  %v200_v17 = vld [vmem:[%s3335_s0 + $0xb4] sm:$0xf]  ;;  %v262_v19 = vmul.bf16 %v198_v15, %v198_v15  ;;  %v263_v20 = vmul.bf16 %v199_v16, %v199_v16  ;;  %v2187_v22 = vcombine.low %v197_v14, %v198_v15 }
  0x45   :  { %v264_v21 = vmul.bf16 %v200_v17, %v200_v17  ;;  %v2188_v24 = vcombine.low %v199_v16, %v200_v17  ;;  %v2814_v16 = vld [vmem:[%s3336_s3] ss:$0 sm:$0xff] }
  0x46   :  { %v2227_v23 = vcombine.low %v261_v18, %v262_v19  ;;  %v2819_v17 = vld [vmem:[%s3337_s4] ss:$0 sm:$0xff] }
  0x47   :  { %v2228_v25 = vcombine.low %v263_v20, %v264_v21 }
  0x4a   :  { %2365 = vmatmul.mubr.bf16.gmra.mxu0 %v2177_v26  ;;  %v201_v26 = vld [vmem:[%s3335_s0 + $0xb8] sm:$0xf] }
  0x4b   :  { %2445 = vmatmul.mubr.bf16.gmra.mxu1 %v2217_v27  ;;  %2368 = vmatprep.mubr.bf16.mxu0 %v2178_v28  ;;  %v202_v27 = vld [vmem:[%s3335_s0 + $0xbc] sm:$0xf]  ;;  %v203_v28 = vld [vmem:[%s3335_s0 + $0xc0] sm:$0xf]  ;;  %v265_v30 = vmul.bf16 %v201_v26, %v201_v26 }
  0x4c   :  { %2448 = vmatprep.mubr.bf16.mxu1 %v2218_v29  ;;  %v204_v29 = vld [vmem:[%s3335_s0 + $0xc4] sm:$0xf]  ;;  %v266_v31 = vmul.bf16 %v202_v27, %v202_v27  ;;  %v267_v32 = vmul.bf16 %v203_v28, %v203_v28  ;;  %v2189_v34 = vcombine.low %v201_v26, %v202_v27 }
  0x4d   :  { %v268_v33 = vmul.bf16 %v204_v29, %v204_v29  ;;  %v2190_v36 = vcombine.low %v203_v28, %v204_v29 }
  0x4e   :  { %v2229_v35 = vcombine.low %v265_v30, %v266_v31 }
  0x4f   :  { %v2230_v37 = vcombine.low %v267_v32, %v268_v33 }
  0x52   :  { %2369 = vmatmul.mubr.bf16.gmra.mxu0 %v2179_v38  ;;  %v205_v38 = vld [vmem:[%s3335_s0 + $0xc8] sm:$0xf] }
  0x53   :  { %2449 = vmatmul.mubr.bf16.gmra.mxu1 %v2219_v39  ;;  %2372 = vmatprep.mubr.bf16.mxu0 %v2180_v40  ;;  %v206_v39 = vld [vmem:[%s3335_s0 + $0xcc] sm:$0xf]  ;;  %v207_v40 = vld [vmem:[%s3335_s0 + $0xd0] sm:$0xf]  ;;  %v269_v42 = vmul.bf16 %v205_v38, %v205_v38 }
  0x54   :  { %2452 = vmatprep.mubr.bf16.mxu1 %v2220_v41  ;;  %v208_v41 = vld [vmem:[%s3335_s0 + $0xd4] sm:$0xf]  ;;  %v270_v43 = vmul.bf16 %v206_v39, %v206_v39  ;;  %v271_v44 = vmul.bf16 %v207_v40, %v207_v40  ;;  %v2191_v46 = vcombine.low %v205_v38, %v206_v39 }
  0x55   :  { %v272_v45 = vmul.bf16 %v208_v41, %v208_v41  ;;  %v2192_v48 = vcombine.low %v207_v40, %v208_v41 }
  0x56   :  { %v2231_v47 = vcombine.low %v269_v42, %v270_v43 }
  0x57   :  { %v2232_v49 = vcombine.low %v271_v44, %v272_v45 }
  0x5a   :  { %2373 = vmatmul.mubr.bf16.gmra.mxu0 %v2181_v50  ;;  %v209_v50 = vld [vmem:[%s3335_s0 + $0xd8] sm:$0xf] }
  0x5b   :  { %2453 = vmatmul.mubr.bf16.gmra.mxu1 %v2221_v51  ;;  %2376 = vmatprep.mubr.bf16.mxu0 %v2182_v52  ;;  %v210_v51 = vld [vmem:[%s3335_s0 + $0xdc] sm:$0xf]  ;;  %v211_v52 = vld [vmem:[%s3335_s0 + $0xe0] sm:$0xf]  ;;  %v273_v54 = vmul.bf16 %v209_v50, %v209_v50 }
  0x5c   :  { %2456 = vmatprep.mubr.bf16.mxu1 %v2222_v53  ;;  %v212_v53 = vld [vmem:[%s3335_s0 + $0xe4] sm:$0xf]  ;;  %v274_v55 = vmul.bf16 %v210_v51, %v210_v51  ;;  %v275_v56 = vmul.bf16 %v211_v52, %v211_v52  ;;  %v2193_v58 = vcombine.low %v209_v50, %v210_v51 }
  0x5d   :  { %v276_v57 = vmul.bf16 %v212_v53, %v212_v53  ;;  %v2194_v60 = vcombine.low %v211_v52, %v212_v53 }
  0x5e   :  { %v2233_v59 = vcombine.low %v273_v54, %v274_v55 }
  0x5f   :  { %v2234_v61 = vcombine.low %v275_v56, %v276_v57 }
  0x62   :  { %2377 = vmatmul.mubr.bf16.gmra.mxu0 %v2183_v62  ;;  %v213_v62 = vld [vmem:[%s3335_s0 + $0xe8] sm:$0xf] }
  0x63   :  { %2457 = vmatmul.mubr.bf16.gmra.mxu1 %v2223_v63  ;;  %2380 = vmatprep.mubr.bf16.mxu0 %v2184_v0  ;;  %v214_v63 = vld [vmem:[%s3335_s0 + $0xec] sm:$0xf]  ;;  %v215_v0 = vld [vmem:[%s3335_s0 + $0xf0] sm:$0xf]  ;;  %v277_v2 = vmul.bf16 %v213_v62, %v213_v62 }
  0x64   :  { %2460 = vmatprep.mubr.bf16.mxu1 %v2224_v1  ;;  %v216_v1 = vld [vmem:[%s3335_s0 + $0xf4] sm:$0xf]  ;;  %v278_v3 = vmul.bf16 %v214_v63, %v214_v63  ;;  %v279_v4 = vmul.bf16 %v215_v0, %v215_v0  ;;  %v2195_v6 = vcombine.low %v213_v62, %v214_v63 }
  0x65   :  { %v280_v5 = vmul.bf16 %v216_v1, %v216_v1  ;;  %v2196_v8 = vcombine.low %v215_v0, %v216_v1 }
  0x66   :  { %v2235_v7 = vcombine.low %v277_v2, %v278_v3 }
  0x67   :  { %v2236_v9 = vcombine.low %v279_v4, %v280_v5 }
  0x6a   :  { %2381 = vmatmul.mubr.bf16.gmra.mxu0 %v2185_v10  ;;  %v217_v10 = vld [vmem:[%s3335_s0 + $0xf8] sm:$0xf] }
  0x6b   :  { %2461 = vmatmul.mubr.bf16.gmra.mxu1 %v2225_v11  ;;  %2384 = vmatprep.mubr.bf16.mxu0 %v2186_v12  ;;  %v218_v11 = vld [vmem:[%s3335_s0 + $0xfc] sm:$0xf]  ;;  %v281_v12 = vmul.bf16 %v217_v10, %v217_v10 }
  0x6c   :  { %2464 = vmatprep.mubr.bf16.mxu1 %v2226_v13  ;;  %v282_v13 = vmul.bf16 %v218_v11, %v218_v11  ;;  %v2197_v14 = vcombine.low %v217_v10, %v218_v11 }
  0x6e   :  { %v2237_v15 = vcombine.low %v281_v12, %v282_v13 }
  0x72   :  { %2385 = vmatmul.mubr.bf16.gmra.mxu0 %v2187_v22 }
  0x73   :  { %2465 = vmatmul.mubr.bf16.gmra.mxu1 %v2227_v23  ;;  %2388 = vmatprep.mubr.bf16.mxu0 %v2188_v24 }
  0x74   :  { %2468 = vmatprep.mubr.bf16.mxu1 %v2228_v25 }
  0x7a   :  { %2389 = vmatmul.mubr.bf16.gmra.mxu0 %v2189_v34 }
  0x7b   :  { %2469 = vmatmul.mubr.bf16.gmra.mxu1 %v2229_v35  ;;  %2392 = vmatprep.mubr.bf16.mxu0 %v2190_v36 }
  0x7c   :  { %2472 = vmatprep.mubr.bf16.mxu1 %v2230_v37 }
  0x82   :  { %2393 = vmatmul.mubr.bf16.gmra.mxu0 %v2191_v46 }
  0x83   :  { %2473 = vmatmul.mubr.bf16.gmra.mxu1 %v2231_v47  ;;  %2396 = vmatprep.mubr.bf16.mxu0 %v2192_v48 }
  0x84   :  { %2476 = vmatprep.mubr.bf16.mxu1 %v2232_v49 }
  0x8a   :  { %2397 = vmatmul.mubr.bf16.gmra.mxu0 %v2193_v58 }
  0x8b   :  { %2477 = vmatmul.mubr.bf16.gmra.mxu1 %v2233_v59  ;;  %2400 = vmatprep.mubr.bf16.mxu0 %v2194_v60 }
  0x8c   :  { %2480 = vmatprep.mubr.bf16.mxu1 %v2234_v61 }
  0x92   :  { %2401 = vmatmul.mubr.bf16.gmra.mxu0 %v2195_v6 }
  0x93   :  { %2481 = vmatmul.mubr.bf16.gmra.mxu1 %v2235_v7  ;;  %2404 = vmatprep.mubr.bf16.mxu0 %v2196_v8 }
  0x94   :  { %2484 = vmatprep.mubr.bf16.mxu1 %v2236_v9 }
  0x9a   :  { %2405 = vmatmul.mubr.bf16.gmra.mxu0 %v2197_v14 }
  0x9b   :  { %2485 = vmatmul.mubr.bf16.gmra.mxu1 %v2237_v15 }
  0xe2   :  { %v2346_v18 = vpop.f32.mrf.mxu0 }
  0xe3   :  { %v1833_v19 = vadd.f32 %v2346_v18, %v2814_v16  ;;  %v2426_v20 = vpop.f32.mrf.mxu1 }
  0xe4   :  { %v2032_v21 = vadd.f32 %v2426_v20, %v2819_v17  ;;  %v637_v22 = vpop.f32.mrf.mxu0 }
  0xe5   :  { %1897 = vst [vmem:[%s3338_s5 + $0x10] sm:$0xff] %v1833_v19  ;;  %v1831_v23 = vadd.f32 %v2814_v16, %v637_v22  ;;  %v1374_v24 = vpop.f32.mrf.mxu1 }
  0xe6   :  { %2096 = vst [vmem:[%s3339_s6 + $0x10] sm:$0xff] %v2032_v21  ;;  %v2030_v25 = vadd.f32 %v2819_v17, %v1374_v24  ;;  %v2347_v26 = vpop.f32.mrf.mxu0 }
  0xe7   :  { %1895 = vst [vmem:[%s3338_s5] sm:$0xff] %v1831_v23  ;;  %v1834_v27 = vadd.f32 %v2347_v26, %v2814_v16  ;;  %v2427_v28 = vpop.f32.mrf.mxu1 }
  0xe8   :  { %2094 = vst [vmem:[%s3339_s6] sm:$0xff] %v2030_v25  ;;  %v2033_v29 = vadd.f32 %v2427_v28, %v2819_v17  ;;  %v640_v30 = vpop.f32.mrf.mxu0 }
  0xe9   :  { %1898 = vst [vmem:[%s3338_s5 + $0x18] sm:$0xff] %v1834_v27  ;;  %v1832_v31 = vadd.f32 %v2814_v16, %v640_v30  ;;  %v1377_v32 = vpop.f32.mrf.mxu1 }
  0xea   :  { %2097 = vst [vmem:[%s3339_s6 + $0x18] sm:$0xff] %v2033_v29  ;;  %v2031_v33 = vadd.f32 %v2819_v17, %v1377_v32  ;;  %v2350_v34 = vpop.f32.mrf.mxu0 }
  0xeb   :  { %1896 = vst [vmem:[%s3338_s5 + $0x8] sm:$0xff] %v1832_v31  ;;  %v1837_v35 = vadd.f32 %v2350_v34, %v2814_v16  ;;  %v2430_v36 = vpop.f32.mrf.mxu1 }
  0xec   :  { %2095 = vst [vmem:[%s3339_s6 + $0x8] sm:$0xff] %v2031_v33  ;;  %v2036_v37 = vadd.f32 %v2430_v36, %v2819_v17  ;;  %v653_v38 = vpop.f32.mrf.mxu0 }
  0xed   :  { %1901 = vst [vmem:[%s3338_s5 + $0x30] sm:$0xff] %v1837_v35  ;;  %v1835_v39 = vadd.f32 %v2814_v16, %v653_v38  ;;  %v1390_v40 = vpop.f32.mrf.mxu1 }
  0xee   :  { %2100 = vst [vmem:[%s3339_s6 + $0x30] sm:$0xff] %v2036_v37  ;;  %v2034_v41 = vadd.f32 %v2819_v17, %v1390_v40  ;;  %v2351_v42 = vpop.f32.mrf.mxu0 }
  0xef   :  { %1899 = vst [vmem:[%s3338_s5 + $0x20] sm:$0xff] %v1835_v39  ;;  %v1838_v43 = vadd.f32 %v2351_v42, %v2814_v16  ;;  %v2431_v44 = vpop.f32.mrf.mxu1 }
  0xf0   :  { %2098 = vst [vmem:[%s3339_s6 + $0x20] sm:$0xff] %v2034_v41  ;;  %v2037_v45 = vadd.f32 %v2431_v44, %v2819_v17  ;;  %v656_v46 = vpop.f32.mrf.mxu0 }
  0xf1   :  { %1902 = vst [vmem:[%s3338_s5 + $0x38] sm:$0xff] %v1838_v43  ;;  %v1836_v47 = vadd.f32 %v2814_v16, %v656_v46  ;;  %v1393_v48 = vpop.f32.mrf.mxu1 }
  0xf2   :  { %2101 = vst [vmem:[%s3339_s6 + $0x38] sm:$0xff] %v2037_v45  ;;  %v2035_v49 = vadd.f32 %v2819_v17, %v1393_v48  ;;  %v2354_v50 = vpop.f32.mrf.mxu0 }
  0xf3   :  { %1900 = vst [vmem:[%s3338_s5 + $0x28] sm:$0xff] %v1836_v47  ;;  %v1841_v51 = vadd.f32 %v2354_v50, %v2814_v16  ;;  %v2434_v52 = vpop.f32.mrf.mxu1 }
  0xf4   :  { %2099 = vst [vmem:[%s3339_s6 + $0x28] sm:$0xff] %v2035_v49  ;;  %v2040_v53 = vadd.f32 %v2434_v52, %v2819_v17  ;;  %v669_v54 = vpop.f32.mrf.mxu0 }
  0xf5   :  { %1905 = vst [vmem:[%s3338_s5 + $0x50] sm:$0xff] %v1841_v51  ;;  %v1839_v55 = vadd.f32 %v2814_v16, %v669_v54  ;;  %v1406_v56 = vpop.f32.mrf.mxu1 }
  0xf6   :  { %2104 = vst [vmem:[%s3339_s6 + $0x50] sm:$0xff] %v2040_v53  ;;  %v2038_v57 = vadd.f32 %v2819_v17, %v1406_v56  ;;  %v2355_v58 = vpop.f32.mrf.mxu0 }
  0xf7   :  { %1903 = vst [vmem:[%s3338_s5 + $0x40] sm:$0xff] %v1839_v55  ;;  %v1842_v59 = vadd.f32 %v2355_v58, %v2814_v16  ;;  %v2435_v60 = vpop.f32.mrf.mxu1 }
  0xf8   :  { %2102 = vst [vmem:[%s3339_s6 + $0x40] sm:$0xff] %v2038_v57  ;;  %v2041_v61 = vadd.f32 %v2435_v60, %v2819_v17  ;;  %v672_v62 = vpop.f32.mrf.mxu0 }
  0xf9   :  { %1906 = vst [vmem:[%s3338_s5 + $0x58] sm:$0xff] %v1842_v59  ;;  %v1840_v63 = vadd.f32 %v2814_v16, %v672_v62  ;;  %v1409_v0 = vpop.f32.mrf.mxu1 }
  0xfa   :  { %2105 = vst [vmem:[%s3339_s6 + $0x58] sm:$0xff] %v2041_v61  ;;  %v2039_v1 = vadd.f32 %v2819_v17, %v1409_v0  ;;  %v2358_v2 = vpop.f32.mrf.mxu0 }
  0xfb   :  { %1904 = vst [vmem:[%s3338_s5 + $0x48] sm:$0xff] %v1840_v63  ;;  %v1845_v3 = vadd.f32 %v2358_v2, %v2814_v16  ;;  %v2438_v4 = vpop.f32.mrf.mxu1 }
  0xfc   :  { %2103 = vst [vmem:[%s3339_s6 + $0x48] sm:$0xff] %v2039_v1  ;;  %v2044_v5 = vadd.f32 %v2438_v4, %v2819_v17  ;;  %v685_v6 = vpop.f32.mrf.mxu0 }
  0xfd   :  { %1909 = vst [vmem:[%s3338_s5 + $0x70] sm:$0xff] %v1845_v3  ;;  %v1843_v7 = vadd.f32 %v2814_v16, %v685_v6  ;;  %v1422_v8 = vpop.f32.mrf.mxu1 }
  0xfe   :  { %2108 = vst [vmem:[%s3339_s6 + $0x70] sm:$0xff] %v2044_v5  ;;  %v2042_v9 = vadd.f32 %v2819_v17, %v1422_v8  ;;  %v2359_v10 = vpop.f32.mrf.mxu0 }
  0xff   :  { %1907 = vst [vmem:[%s3338_s5 + $0x60] sm:$0xff] %v1843_v7  ;;  %v1846_v11 = vadd.f32 %v2359_v10, %v2814_v16  ;;  %v2439_v12 = vpop.f32.mrf.mxu1 }
 0x100   :  { %2106 = vst [vmem:[%s3339_s6 + $0x60] sm:$0xff] %v2042_v9  ;;  %v2045_v13 = vadd.f32 %v2439_v12, %v2819_v17  ;;  %v688_v14 = vpop.f32.mrf.mxu0 }
 0x101   :  { %1910 = vst [vmem:[%s3338_s5 + $0x78] sm:$0xff] %v1846_v11  ;;  %v1844_v15 = vadd.f32 %v2814_v16, %v688_v14  ;;  %v1425_v18 = vpop.f32.mrf.mxu1 }
 0x102   :  { %2109 = vst [vmem:[%s3339_s6 + $0x78] sm:$0xff] %v2045_v13  ;;  %v2043_v19 = vadd.f32 %v2819_v17, %v1425_v18  ;;  %v2362_v20 = vpop.f32.mrf.mxu0 }
 0x103   :  { %1908 = vst [vmem:[%s3338_s5 + $0x68] sm:$0xff] %v1844_v15  ;;  %v1849_v21 = vadd.f32 %v2362_v20, %v2814_v16  ;;  %v2442_v22 = vpop.f32.mrf.mxu1 }
 0x104   :  { %2107 = vst [vmem:[%s3339_s6 + $0x68] sm:$0xff] %v2043_v19  ;;  %v2048_v23 = vadd.f32 %v2442_v22, %v2819_v17  ;;  %v701_v24 = vpop.f32.mrf.mxu0 }
 0x105   :  { %1913 = vst [vmem:[%s3338_s5 + $0x90] sm:$0xff] %v1849_v21  ;;  %v1847_v25 = vadd.f32 %v2814_v16, %v701_v24  ;;  %v1438_v26 = vpop.f32.mrf.mxu1 }
 0x106   :  { %2112 = vst [vmem:[%s3339_s6 + $0x90] sm:$0xff] %v2048_v23  ;;  %v2046_v27 = vadd.f32 %v2819_v17, %v1438_v26  ;;  %v2363_v28 = vpop.f32.mrf.mxu0 }
 0x107   :  { %1911 = vst [vmem:[%s3338_s5 + $0x80] sm:$0xff] %v1847_v25  ;;  %v1850_v29 = vadd.f32 %v2363_v28, %v2814_v16  ;;  %v2443_v30 = vpop.f32.mrf.mxu1 }
 0x108   :  { %2110 = vst [vmem:[%s3339_s6 + $0x80] sm:$0xff] %v2046_v27  ;;  %v2049_v31 = vadd.f32 %v2443_v30, %v2819_v17  ;;  %v704_v32 = vpop.f32.mrf.mxu0 }
 0x109   :  { %1914 = vst [vmem:[%s3338_s5 + $0x98] sm:$0xff] %v1850_v29  ;;  %v1848_v33 = vadd.f32 %v2814_v16, %v704_v32  ;;  %v1441_v34 = vpop.f32.mrf.mxu1 }
 0x10a   :  { %2113 = vst [vmem:[%s3339_s6 + $0x98] sm:$0xff] %v2049_v31  ;;  %v2047_v35 = vadd.f32 %v2819_v17, %v1441_v34  ;;  %v2366_v36 = vpop.f32.mrf.mxu0 }
 0x10b   :  { %1912 = vst [vmem:[%s3338_s5 + $0x88] sm:$0xff] %v1848_v33  ;;  %v1853_v37 = vadd.f32 %v2366_v36, %v2814_v16  ;;  %v2446_v38 = vpop.f32.mrf.mxu1 }
 0x10c   :  { %2111 = vst [vmem:[%s3339_s6 + $0x88] sm:$0xff] %v2047_v35  ;;  %v2052_v39 = vadd.f32 %v2446_v38, %v2819_v17  ;;  %v717_v40 = vpop.f32.mrf.mxu0 }
 0x10d   :  { %1917 = vst [vmem:[%s3338_s5 + $0xb0] sm:$0xff] %v1853_v37  ;;  %v1851_v41 = vadd.f32 %v2814_v16, %v717_v40  ;;  %v1454_v42 = vpop.f32.mrf.mxu1 }
 0x10e   :  { %2116 = vst [vmem:[%s3339_s6 + $0xb0] sm:$0xff] %v2052_v39  ;;  %v2050_v43 = vadd.f32 %v2819_v17, %v1454_v42  ;;  %v2367_v44 = vpop.f32.mrf.mxu0 }
 0x10f   :  { %1915 = vst [vmem:[%s3338_s5 + $0xa0] sm:$0xff] %v1851_v41  ;;  %v1854_v45 = vadd.f32 %v2367_v44, %v2814_v16  ;;  %v2447_v46 = vpop.f32.mrf.mxu1 }
 0x110   :  { %2114 = vst [vmem:[%s3339_s6 + $0xa0] sm:$0xff] %v2050_v43  ;;  %v2053_v47 = vadd.f32 %v2447_v46, %v2819_v17  ;;  %v720_v48 = vpop.f32.mrf.mxu0 }
 0x111   :  { %1918 = vst [vmem:[%s3338_s5 + $0xb8] sm:$0xff] %v1854_v45  ;;  %v1852_v49 = vadd.f32 %v2814_v16, %v720_v48  ;;  %v1457_v50 = vpop.f32.mrf.mxu1 }
 0x112   :  { %2117 = vst [vmem:[%s3339_s6 + $0xb8] sm:$0xff] %v2053_v47  ;;  %v2051_v51 = vadd.f32 %v2819_v17, %v1457_v50  ;;  %v2370_v52 = vpop.f32.mrf.mxu0 }
 0x113   :  { %1916 = vst [vmem:[%s3338_s5 + $0xa8] sm:$0xff] %v1852_v49  ;;  %v1857_v53 = vadd.f32 %v2370_v52, %v2814_v16  ;;  %v2450_v54 = vpop.f32.mrf.mxu1 }
 0x114   :  { %2115 = vst [vmem:[%s3339_s6 + $0xa8] sm:$0xff] %v2051_v51  ;;  %v2056_v55 = vadd.f32 %v2450_v54, %v2819_v17  ;;  %v733_v56 = vpop.f32.mrf.mxu0 }
 0x115   :  { %1921 = vst [vmem:[%s3338_s5 + $0xd0] sm:$0xff] %v1857_v53  ;;  %v1855_v57 = vadd.f32 %v2814_v16, %v733_v56  ;;  %v1470_v58 = vpop.f32.mrf.mxu1 }
 0x116   :  { %2120 = vst [vmem:[%s3339_s6 + $0xd0] sm:$0xff] %v2056_v55  ;;  %v2054_v59 = vadd.f32 %v2819_v17, %v1470_v58  ;;  %v2371_v60 = vpop.f32.mrf.mxu0 }
 0x117   :  { %1919 = vst [vmem:[%s3338_s5 + $0xc0] sm:$0xff] %v1855_v57  ;;  %v1858_v61 = vadd.f32 %v2371_v60, %v2814_v16  ;;  %v2451_v62 = vpop.f32.mrf.mxu1 }
 0x118   :  { %2118 = vst [vmem:[%s3339_s6 + $0xc0] sm:$0xff] %v2054_v59  ;;  %v2057_v63 = vadd.f32 %v2451_v62, %v2819_v17  ;;  %v736_v0 = vpop.f32.mrf.mxu0 }
 0x119   :  { %1922 = vst [vmem:[%s3338_s5 + $0xd8] sm:$0xff] %v1858_v61  ;;  %v1856_v1 = vadd.f32 %v2814_v16, %v736_v0  ;;  %v1473_v2 = vpop.f32.mrf.mxu1 }
 0x11a   :  { %2121 = vst [vmem:[%s3339_s6 + $0xd8] sm:$0xff] %v2057_v63  ;;  %v2055_v3 = vadd.f32 %v2819_v17, %v1473_v2  ;;  %v2374_v4 = vpop.f32.mrf.mxu0 }
 0x11b   :  { %1920 = vst [vmem:[%s3338_s5 + $0xc8] sm:$0xff] %v1856_v1  ;;  %v1861_v5 = vadd.f32 %v2374_v4, %v2814_v16  ;;  %v2454_v6 = vpop.f32.mrf.mxu1 }
 0x11c   :  { %2119 = vst [vmem:[%s3339_s6 + $0xc8] sm:$0xff] %v2055_v3  ;;  %v2060_v7 = vadd.f32 %v2454_v6, %v2819_v17  ;;  %v749_v8 = vpop.f32.mrf.mxu0 }
 0x11d   :  { %1925 = vst [vmem:[%s3338_s5 + $0xf0] sm:$0xff] %v1861_v5  ;;  %v1859_v9 = vadd.f32 %v2814_v16, %v749_v8  ;;  %v1486_v10 = vpop.f32.mrf.mxu1 }
 0x11e   :  { %2124 = vst [vmem:[%s3339_s6 + $0xf0] sm:$0xff] %v2060_v7  ;;  %v2058_v11 = vadd.f32 %v2819_v17, %v1486_v10  ;;  %v2375_v12 = vpop.f32.mrf.mxu0 }
 0x11f   :  { %1923 = vst [vmem:[%s3338_s5 + $0xe0] sm:$0xff] %v1859_v9  ;;  %v1862_v13 = vadd.f32 %v2375_v12, %v2814_v16  ;;  %v2455_v14 = vpop.f32.mrf.mxu1 }
 0x120   :  { %2122 = vst [vmem:[%s3339_s6 + $0xe0] sm:$0xff] %v2058_v11  ;;  %v2061_v15 = vadd.f32 %v2455_v14, %v2819_v17  ;;  %v752_v18 = vpop.f32.mrf.mxu0 }
 0x121   :  { %1926 = vst [vmem:[%s3338_s5 + $0xf8] sm:$0xff] %v1862_v13  ;;  %v1860_v19 = vadd.f32 %v2814_v16, %v752_v18  ;;  %v1489_v20 = vpop.f32.mrf.mxu1 }
 0x122   :  { %2125 = vst [vmem:[%s3339_s6 + $0xf8] sm:$0xff] %v2061_v15  ;;  %v2059_v21 = vadd.f32 %v2819_v17, %v1489_v20  ;;  %v2378_v22 = vpop.f32.mrf.mxu0 }
 0x123   :  { %1924 = vst [vmem:[%s3338_s5 + $0xe8] sm:$0xff] %v1860_v19  ;;  %v1865_v23 = vadd.f32 %v2378_v22, %v2814_v16  ;;  %v2458_v24 = vpop.f32.mrf.mxu1 }
 0x124   :  { %2123 = vst [vmem:[%s3339_s6 + $0xe8] sm:$0xff] %v2059_v21  ;;  %v2064_v25 = vadd.f32 %v2458_v24, %v2819_v17  ;;  %v765_v26 = vpop.f32.mrf.mxu0 }
 0x125   :  { %1929 = vst [vmem:[%s3338_s5 + $0x110] sm:$0xff] %v1865_v23  ;;  %v1863_v27 = vadd.f32 %v2814_v16, %v765_v26  ;;  %v1502_v28 = vpop.f32.mrf.mxu1 }
 0x126   :  { %2128 = vst [vmem:[%s3339_s6 + $0x110] sm:$0xff] %v2064_v25  ;;  %v2062_v29 = vadd.f32 %v2819_v17, %v1502_v28  ;;  %v2379_v30 = vpop.f32.mrf.mxu0 }
 0x127   :  { %1927 = vst [vmem:[%s3338_s5 + $0x100] sm:$0xff] %v1863_v27  ;;  %v1866_v31 = vadd.f32 %v2379_v30, %v2814_v16  ;;  %v2459_v32 = vpop.f32.mrf.mxu1 }
 0x128   :  { %2126 = vst [vmem:[%s3339_s6 + $0x100] sm:$0xff] %v2062_v29  ;;  %v2065_v33 = vadd.f32 %v2459_v32, %v2819_v17  ;;  %v768_v34 = vpop.f32.mrf.mxu0 }
 0x129   :  { %1930 = vst [vmem:[%s3338_s5 + $0x118] sm:$0xff] %v1866_v31  ;;  %v1864_v35 = vadd.f32 %v2814_v16, %v768_v34  ;;  %v1505_v36 = vpop.f32.mrf.mxu1 }
 0x12a   :  { %2129 = vst [vmem:[%s3339_s6 + $0x118] sm:$0xff] %v2065_v33  ;;  %v2063_v37 = vadd.f32 %v2819_v17, %v1505_v36  ;;  %v2382_v38 = vpop.f32.mrf.mxu0 }
 0x12b   :  { %1928 = vst [vmem:[%s3338_s5 + $0x108] sm:$0xff] %v1864_v35  ;;  %v1869_v39 = vadd.f32 %v2382_v38, %v2814_v16  ;;  %v2462_v40 = vpop.f32.mrf.mxu1 }
 0x12c   :  { %2127 = vst [vmem:[%s3339_s6 + $0x108] sm:$0xff] %v2063_v37  ;;  %v2068_v41 = vadd.f32 %v2462_v40, %v2819_v17  ;;  %v781_v42 = vpop.f32.mrf.mxu0 }
 0x12d   :  { %1933 = vst [vmem:[%s3338_s5 + $0x130] sm:$0xff] %v1869_v39  ;;  %v1867_v43 = vadd.f32 %v2814_v16, %v781_v42  ;;  %v1518_v44 = vpop.f32.mrf.mxu1 }
 0x12e   :  { %2132 = vst [vmem:[%s3339_s6 + $0x130] sm:$0xff] %v2068_v41  ;;  %v2066_v45 = vadd.f32 %v2819_v17, %v1518_v44  ;;  %v2383_v46 = vpop.f32.mrf.mxu0 }
 0x12f   :  { %1931 = vst [vmem:[%s3338_s5 + $0x120] sm:$0xff] %v1867_v43  ;;  %v1870_v47 = vadd.f32 %v2383_v46, %v2814_v16  ;;  %v2463_v48 = vpop.f32.mrf.mxu1 }
 0x130   :  { %2130 = vst [vmem:[%s3339_s6 + $0x120] sm:$0xff] %v2066_v45  ;;  %v2069_v49 = vadd.f32 %v2463_v48, %v2819_v17  ;;  %v784_v50 = vpop.f32.mrf.mxu0 }
 0x131   :  { %1934 = vst [vmem:[%s3338_s5 + $0x138] sm:$0xff] %v1870_v47  ;;  %v1868_v51 = vadd.f32 %v2814_v16, %v784_v50  ;;  %v1521_v52 = vpop.f32.mrf.mxu1 }
 0x132   :  { %2133 = vst [vmem:[%s3339_s6 + $0x138] sm:$0xff] %v2069_v49  ;;  %v2067_v53 = vadd.f32 %v2819_v17, %v1521_v52  ;;  %v2386_v54 = vpop.f32.mrf.mxu0 }
 0x133   :  { %1932 = vst [vmem:[%s3338_s5 + $0x128] sm:$0xff] %v1868_v51  ;;  %v1873_v55 = vadd.f32 %v2386_v54, %v2814_v16  ;;  %v2466_v56 = vpop.f32.mrf.mxu1 }
 0x134   :  { %2131 = vst [vmem:[%s3339_s6 + $0x128] sm:$0xff] %v2067_v53  ;;  %v2072_v57 = vadd.f32 %v2466_v56, %v2819_v17  ;;  %v797_v58 = vpop.f32.mrf.mxu0 }
 0x135   :  { %1937 = vst [vmem:[%s3338_s5 + $0x150] sm:$0xff] %v1873_v55  ;;  %v1871_v59 = vadd.f32 %v2814_v16, %v797_v58  ;;  %v1534_v60 = vpop.f32.mrf.mxu1 }
 0x136   :  { %2136 = vst [vmem:[%s3339_s6 + $0x150] sm:$0xff] %v2072_v57  ;;  %v2070_v61 = vadd.f32 %v2819_v17, %v1534_v60  ;;  %v2387_v62 = vpop.f32.mrf.mxu0 }
 0x137   :  { %1935 = vst [vmem:[%s3338_s5 + $0x140] sm:$0xff] %v1871_v59  ;;  %v1874_v63 = vadd.f32 %v2387_v62, %v2814_v16  ;;  %v2467_v0 = vpop.f32.mrf.mxu1 }
 0x138   :  { %2134 = vst [vmem:[%s3339_s6 + $0x140] sm:$0xff] %v2070_v61  ;;  %v2073_v1 = vadd.f32 %v2467_v0, %v2819_v17  ;;  %v800_v2 = vpop.f32.mrf.mxu0 }
 0x139   :  { %1938 = vst [vmem:[%s3338_s5 + $0x158] sm:$0xff] %v1874_v63  ;;  %v1872_v3 = vadd.f32 %v2814_v16, %v800_v2  ;;  %v1537_v4 = vpop.f32.mrf.mxu1 }
 0x13a   :  { %2137 = vst [vmem:[%s3339_s6 + $0x158] sm:$0xff] %v2073_v1  ;;  %v2071_v5 = vadd.f32 %v2819_v17, %v1537_v4  ;;  %v2390_v6 = vpop.f32.mrf.mxu0 }
 0x13b   :  { %1936 = vst [vmem:[%s3338_s5 + $0x148] sm:$0xff] %v1872_v3  ;;  %v1877_v7 = vadd.f32 %v2390_v6, %v2814_v16  ;;  %v2470_v8 = vpop.f32.mrf.mxu1 }
 0x13c   :  { %2135 = vst [vmem:[%s3339_s6 + $0x148] sm:$0xff] %v2071_v5  ;;  %v2076_v9 = vadd.f32 %v2470_v8, %v2819_v17  ;;  %v813_v10 = vpop.f32.mrf.mxu0 }
 0x13d   :  { %1941 = vst [vmem:[%s3338_s5 + $0x170] sm:$0xff] %v1877_v7  ;;  %v1875_v11 = vadd.f32 %v2814_v16, %v813_v10  ;;  %v1550_v12 = vpop.f32.mrf.mxu1 }
 0x13e   :  { %2140 = vst [vmem:[%s3339_s6 + $0x170] sm:$0xff] %v2076_v9  ;;  %v2074_v13 = vadd.f32 %v2819_v17, %v1550_v12  ;;  %v2391_v14 = vpop.f32.mrf.mxu0 }
 0x13f   :  { %1939 = vst [vmem:[%s3338_s5 + $0x160] sm:$0xff] %v1875_v11  ;;  %v1878_v15 = vadd.f32 %v2391_v14, %v2814_v16  ;;  %v2471_v18 = vpop.f32.mrf.mxu1 }
 0x140   :  { %2138 = vst [vmem:[%s3339_s6 + $0x160] sm:$0xff] %v2074_v13  ;;  %v2077_v19 = vadd.f32 %v2471_v18, %v2819_v17  ;;  %v816_v20 = vpop.f32.mrf.mxu0 }
 0x141   :  { %1942 = vst [vmem:[%s3338_s5 + $0x178] sm:$0xff] %v1878_v15  ;;  %v1876_v21 = vadd.f32 %v2814_v16, %v816_v20  ;;  %v1553_v22 = vpop.f32.mrf.mxu1 }
 0x142   :  { %2141 = vst [vmem:[%s3339_s6 + $0x178] sm:$0xff] %v2077_v19  ;;  %v2075_v23 = vadd.f32 %v2819_v17, %v1553_v22  ;;  %v2394_v24 = vpop.f32.mrf.mxu0 }
 0x143   :  { %1940 = vst [vmem:[%s3338_s5 + $0x168] sm:$0xff] %v1876_v21  ;;  %v1881_v25 = vadd.f32 %v2394_v24, %v2814_v16  ;;  %v2474_v26 = vpop.f32.mrf.mxu1 }
 0x144   :  { %2139 = vst [vmem:[%s3339_s6 + $0x168] sm:$0xff] %v2075_v23  ;;  %v2080_v27 = vadd.f32 %v2474_v26, %v2819_v17  ;;  %v829_v28 = vpop.f32.mrf.mxu0 }
 0x145   :  { %1945 = vst [vmem:[%s3338_s5 + $0x190] sm:$0xff] %v1881_v25  ;;  %v1879_v29 = vadd.f32 %v2814_v16, %v829_v28  ;;  %v1566_v30 = vpop.f32.mrf.mxu1 }
 0x146   :  { %2144 = vst [vmem:[%s3339_s6 + $0x190] sm:$0xff] %v2080_v27  ;;  %v2078_v31 = vadd.f32 %v2819_v17, %v1566_v30  ;;  %v2395_v32 = vpop.f32.mrf.mxu0 }
 0x147   :  { %1943 = vst [vmem:[%s3338_s5 + $0x180] sm:$0xff] %v1879_v29  ;;  %v1882_v33 = vadd.f32 %v2395_v32, %v2814_v16  ;;  %v2475_v34 = vpop.f32.mrf.mxu1 }
 0x148   :  { %2142 = vst [vmem:[%s3339_s6 + $0x180] sm:$0xff] %v2078_v31  ;;  %v2081_v35 = vadd.f32 %v2475_v34, %v2819_v17  ;;  %v832_v36 = vpop.f32.mrf.mxu0 }
 0x149   :  { %1946 = vst [vmem:[%s3338_s5 + $0x198] sm:$0xff] %v1882_v33  ;;  %v1880_v37 = vadd.f32 %v2814_v16, %v832_v36  ;;  %v1569_v38 = vpop.f32.mrf.mxu1 }
 0x14a   :  { %2145 = vst [vmem:[%s3339_s6 + $0x198] sm:$0xff] %v2081_v35  ;;  %v2079_v39 = vadd.f32 %v2819_v17, %v1569_v38  ;;  %v2398_v40 = vpop.f32.mrf.mxu0 }
 0x14b   :  { %1944 = vst [vmem:[%s3338_s5 + $0x188] sm:$0xff] %v1880_v37  ;;  %v1885_v41 = vadd.f32 %v2398_v40, %v2814_v16  ;;  %v2478_v42 = vpop.f32.mrf.mxu1 }
 0x14c   :  { %2143 = vst [vmem:[%s3339_s6 + $0x188] sm:$0xff] %v2079_v39  ;;  %v2084_v43 = vadd.f32 %v2478_v42, %v2819_v17  ;;  %v845_v44 = vpop.f32.mrf.mxu0 }
 0x14d   :  { %1949 = vst [vmem:[%s3338_s5 + $0x1b0] sm:$0xff] %v1885_v41  ;;  %v1883_v45 = vadd.f32 %v2814_v16, %v845_v44  ;;  %v1582_v46 = vpop.f32.mrf.mxu1 }
 0x14e   :  { %2148 = vst [vmem:[%s3339_s6 + $0x1b0] sm:$0xff] %v2084_v43  ;;  %v2082_v47 = vadd.f32 %v2819_v17, %v1582_v46  ;;  %v2399_v48 = vpop.f32.mrf.mxu0 }
 0x14f   :  { %1947 = vst [vmem:[%s3338_s5 + $0x1a0] sm:$0xff] %v1883_v45  ;;  %v1886_v49 = vadd.f32 %v2399_v48, %v2814_v16  ;;  %v2479_v50 = vpop.f32.mrf.mxu1 }
 0x150   :  { %2146 = vst [vmem:[%s3339_s6 + $0x1a0] sm:$0xff] %v2082_v47  ;;  %v2085_v51 = vadd.f32 %v2479_v50, %v2819_v17  ;;  %v848_v52 = vpop.f32.mrf.mxu0 }
 0x151   :  { %1950 = vst [vmem:[%s3338_s5 + $0x1b8] sm:$0xff] %v1886_v49  ;;  %v1884_v53 = vadd.f32 %v2814_v16, %v848_v52  ;;  %v1585_v54 = vpop.f32.mrf.mxu1 }
 0x152   :  { %2149 = vst [vmem:[%s3339_s6 + $0x1b8] sm:$0xff] %v2085_v51  ;;  %v2083_v55 = vadd.f32 %v2819_v17, %v1585_v54  ;;  %v2402_v56 = vpop.f32.mrf.mxu0 }
 0x153   :  { %1948 = vst [vmem:[%s3338_s5 + $0x1a8] sm:$0xff] %v1884_v53  ;;  %v1889_v57 = vadd.f32 %v2402_v56, %v2814_v16  ;;  %v2482_v58 = vpop.f32.mrf.mxu1 }
 0x154   :  { %2147 = vst [vmem:[%s3339_s6 + $0x1a8] sm:$0xff] %v2083_v55  ;;  %v2088_v59 = vadd.f32 %v2482_v58, %v2819_v17  ;;  %v861_v60 = vpop.f32.mrf.mxu0 }
 0x155   :  { %1953 = vst [vmem:[%s3338_s5 + $0x1d0] sm:$0xff] %v1889_v57  ;;  %v1887_v61 = vadd.f32 %v2814_v16, %v861_v60  ;;  %v1598_v62 = vpop.f32.mrf.mxu1 }
 0x156   :  { %2152 = vst [vmem:[%s3339_s6 + $0x1d0] sm:$0xff] %v2088_v59  ;;  %v2086_v63 = vadd.f32 %v2819_v17, %v1598_v62  ;;  %v2403_v0 = vpop.f32.mrf.mxu0 }
 0x157   :  { %1951 = vst [vmem:[%s3338_s5 + $0x1c0] sm:$0xff] %v1887_v61  ;;  %v1890_v1 = vadd.f32 %v2403_v0, %v2814_v16  ;;  %v2483_v2 = vpop.f32.mrf.mxu1 }
 0x158   :  { %2150 = vst [vmem:[%s3339_s6 + $0x1c0] sm:$0xff] %v2086_v63  ;;  %v2089_v3 = vadd.f32 %v2483_v2, %v2819_v17  ;;  %v864_v4 = vpop.f32.mrf.mxu0 }
 0x159   :  { %1954 = vst [vmem:[%s3338_s5 + $0x1d8] sm:$0xff] %v1890_v1  ;;  %v1888_v5 = vadd.f32 %v2814_v16, %v864_v4  ;;  %v1601_v6 = vpop.f32.mrf.mxu1 }
 0x15a   :  { %2153 = vst [vmem:[%s3339_s6 + $0x1d8] sm:$0xff] %v2089_v3  ;;  %v2087_v7 = vadd.f32 %v2819_v17, %v1601_v6  ;;  %v2406_v8 = vpop.f32.mrf.mxu0 }
 0x15b   :  { %1952 = vst [vmem:[%s3338_s5 + $0x1c8] sm:$0xff] %v1888_v5  ;;  %v1893_v9 = vadd.f32 %v2406_v8, %v2814_v16  ;;  %v2486_v10 = vpop.f32.mrf.mxu1 }
 0x15c   :  { %2151 = vst [vmem:[%s3339_s6 + $0x1c8] sm:$0xff] %v2087_v7  ;;  %v2092_v11 = vadd.f32 %v2486_v10, %v2819_v17  ;;  %v877_v12 = vpop.f32.mrf.mxu0 }
 0x15d   :  { %1957 = vst [vmem:[%s3338_s5 + $0x1f0] sm:$0xff] %v1893_v9  ;;  %v1891_v13 = vadd.f32 %v2814_v16, %v877_v12  ;;  %v1614_v14 = vpop.f32.mrf.mxu1 }
 0x15e   :  { %2156 = vst [vmem:[%s3339_s6 + $0x1f0] sm:$0xff] %v2092_v11  ;;  %v2090_v15 = vadd.f32 %v2819_v17, %v1614_v14  ;;  %v2407_v18 = vpop.f32.mrf.mxu0 }
 0x15f   :  { %1955 = vst [vmem:[%s3338_s5 + $0x1e0] sm:$0xff] %v1891_v13  ;;  %v1894_v19 = vadd.f32 %v2407_v18, %v2814_v16  ;;  %v2487_v20 = vpop.f32.mrf.mxu1 }
 0x160   :  { %2154 = vst [vmem:[%s3339_s6 + $0x1e0] sm:$0xff] %v2090_v15  ;;  %v2093_v21 = vadd.f32 %v2487_v20, %v2819_v17  ;;  %v880_v22 = vpop.f32.mrf.mxu0 }
 0x161   :  { %1958 = vst [vmem:[%s3338_s5 + $0x1f8] sm:$0xff] %v1894_v19  ;;  %v1892_v23 = vadd.f32 %v2814_v16, %v880_v22  ;;  %v1617_v24 = vpop.f32.mrf.mxu1 }
 0x162   :  { %2157 = vst [vmem:[%s3339_s6 + $0x1f8] sm:$0xff] %v2093_v21  ;;  %v2091_v25 = vadd.f32 %v2819_v17, %v1617_v24 }
 0x163   :  { %1956 = vst [vmem:[%s3338_s5 + $0x1e8] sm:$0xff] %v1892_v23 }
 0x164   :  { %2155 = vst [vmem:[%s3339_s6 + $0x1e8] sm:$0xff] %v2091_v25 }

</bundles_post_ra>
